<compile_context>
chip_gen: v6e
topology: v6e:2x2x1
jax: 0.10.0
libtpu: 0.0.40
codegen_flags: <defaults>
</compile_context>

<pallas_src>
import jax
import jax.numpy as jnp
from jax.experimental import pallas as pl
from jax.experimental.pallas import tpu as pltpu


def _round_up(x, m):
    return ((x + m - 1) // m) * m


def _predictor_kernel(x_ref, w_ref, b_ref, out_ref):
    # x_ref: (TN, C, HW) f32 -- native NCHW view: HW on lanes, C on sublanes.
    # AdaptiveAvgPool2d(1) is a mean over HW; the 1/HW scale is folded into
    # w_ref by the wrapper, so a plain cross-lane sum suffices here.
    pooled = jnp.sum(x_ref[...], axis=-1)                      # (TN, C)
    # Fused cls_score + bbox_pred: one lane-dense matmul + bias broadcast.
    out_ref[...] = (
        jnp.dot(pooled, w_ref[...], preferred_element_type=jnp.float32)
        + b_ref[...]
    )


def fast_rcnn_predictor(x_nchw, w_cls, b_cls, w_bbox, b_bbox, *, max_tn=256):
    """x_nchw: (N, C, H, W) f32. Weights stored as (in, out); biases as (1, out)."""
    N, C, H, W = x_nchw.shape
    HW = H * W
    num_classes = w_cls.shape[1]
    num_bbox_out = w_bbox.shape[1]

    # ---- layout plumbing in plain JAX (free reshape only, no HBM passes) ----
    x_view = x_nchw.reshape(N, C, HW)
    # TODO(synk): if the upstream ROI head ever hands us channels-last with
    # C a multiple of 128, switch to a (N, HW, C) BlockSpec with a sublane
    # reduce instead; with NCHW inputs the native view is strictly cheaper.

    # Fuse both linears into one padded, lane-dense output matmul, with the
    # 1/HW of the average pool folded into the weights.
    o_total = num_classes + num_bbox_out
    o_pad = max(128, _round_up(o_total, 128))
    w_cat = jnp.concatenate([w_cls, w_bbox], axis=1) * (1.0 / HW)   # (C, O)
    b_cat = jnp.concatenate([b_cls, b_bbox], axis=1)                # (1, O)
    if o_pad != o_total:
        # Zero-fill padded output columns so they never leak into results.
        w_cat = jnp.pad(w_cat, ((0, 0), (0, o_pad - o_total)))
        b_cat = jnp.pad(b_cat, ((0, 0), (0, o_pad - o_total)))

    # ---- N tiling -----------------------------------------------------------
    # ~6 MiB per x buffer (double-buffered ~12 MiB): past the ~1 MiB streaming
    # knee on every generation, fits v7x's 64 MiB VMEM with room to spare.
    x_row_bytes = C * HW * 4
    budget_bytes = 6 * 1024 * 1024
    tn_fit = max(8, (budget_bytes // max(x_row_bytes, 1)) // 8 * 8)
    # Prefer >= ~8 grid steps when N allows, so the "parallel" N axis can be
    # sharded across both TensorCores on v7x (no-op on single-TC v5e/v6e).
    tn_split = max(8, _round_up(pl.cdiv(N, 8), 8))
    tn = max(8, min(max_tn, tn_fit, tn_split))
    if tn >= N:
        tn = N  # single block == full array dim (satisfies the tiling rule)
    grid = (pl.cdiv(N, tn),)   # partial tail block is masked; no jnp.pad of x

    # ---- VMEM budget: actual need + headroom, not the full 64 MiB ----------
    x_tile_bytes = tn * C * HW * 4
    out_tile_bytes = tn * o_pad * 4
    wb_bytes = (C * o_pad + o_pad) * 4
    vmem_need = 2 * x_tile_bytes + 2 * out_tile_bytes + 2 * wb_bytes
    vmem_limit = int(min(32 * 1024 * 1024,
                         max(16 * 1024 * 1024, vmem_need + 8 * 1024 * 1024)))

    cost = pl.CostEstimate(
        flops=N * C * HW + 2 * N * C * o_pad,          # pooling adds + matmul
        transcendentals=0,
        bytes_accessed=(N * C * HW + C * o_pad + o_pad + N * o_pad) * 4,
    )

    out = pl.pallas_call(
        _predictor_kernel,
        out_shape=jax.ShapeDtypeStruct((N, o_pad), jnp.float32),
        grid_spec=pltpu.PrefetchScalarGridSpec(
            num_scalar_prefetch=0,
            grid=grid,
            in_specs=[
                # x streams over N; weights/bias stay resident (constant maps).
                pl.BlockSpec((tn, C, HW), lambda i: (i, 0, 0)),
                pl.BlockSpec((C, o_pad), lambda i: (0, 0)),
                pl.BlockSpec((1, o_pad), lambda i: (0, 0)),
            ],
            out_specs=pl.BlockSpec((tn, o_pad), lambda i: (i, 0)),
        ),
        compiler_params=pltpu.CompilerParams(
            dimension_semantics=("parallel",),
            vmem_limit_bytes=vmem_limit,
        ),
        cost_estimate=cost,
    )(x_view, w_cat, b_cat)

    # Slice the padded output columns back apart.
    cls_logit = out[:, :num_classes]
    bbox_pred = out[:, num_classes:num_classes + num_bbox_out]
    return cls_logit, bbox_pred


if __name__ == "__main__":
    # Small, forward-consistent shapes:
    N, C, H, W = 2, 4, 16, 16            # in_channels = 4
    num_classes = 8                       # config.MODEL.ROI_BOX_HEAD.NUM_CLASSES
    cls_agnostic = False                  # config.MODEL.CLS_AGNOSTIC_BBOX_REG
    num_bbox_reg_classes = 2 if cls_agnostic else num_classes
    num_bbox_out = num_bbox_reg_classes * 4

    key = jax.random.PRNGKey(0)
    k_x, k_wc, k_wb = jax.random.split(key, 3)

    x = jax.random.normal(k_x, (N, C, H, W), dtype=jnp.float32)

    # nn.init.normal_(cls_score.weight, std=0.01); bias = 0
    # PyTorch Linear weight is (out, in); we store the transpose (in, out).
    w_cls = 0.01 * jax.random.normal(k_wc, (C, num_classes), dtype=jnp.float32)
    b_cls = jnp.zeros((1, num_classes), dtype=jnp.float32)

    # nn.init.normal_(bbox_pred.weight, std=0.001); bias = 0
    w_bbox = 0.001 * jax.random.normal(k_wb, (C, num_bbox_out), dtype=jnp.float32)
    b_bbox = jnp.zeros((1, num_bbox_out), dtype=jnp.float32)

    cls_logit, bbox_pred = fast_rcnn_predictor(x, w_cls, b_cls, w_bbox, b_bbox)
    jax.block_until_ready((cls_logit, bbox_pred))

    # Reference check in plain JAX (same math as the PyTorch forward).
    pooled_ref = jnp.mean(x.reshape(N, C, -1), axis=-1)
    cls_ref = pooled_ref @ w_cls + b_cls
    bbox_ref = pooled_ref @ w_bbox + b_bbox
    assert cls_logit.shape == (N, num_classes)
    assert bbox_pred.shape == (N, num_bbox_out)
    assert jnp.allclose(cls_logit, cls_ref, atol=2e-5)
    assert jnp.allclose(bbox_pred, bbox_ref, atol=2e-5)

    print("KERNEL_OK")
</pallas_src>

<mosaic_0001>
module attributes {stable_mosaic.version = 11 : i64} {
  func.func @_predictor_kernel(%arg0: i32, %arg1: memref<2x4x256xf32, #tpu.memory_space<vmem>>, %arg2: memref<4x128xf32, #tpu.memory_space<vmem>>, %arg3: memref<1x128xf32, #tpu.memory_space<vmem>>, %arg4: memref<2x128xf32, #tpu.memory_space<vmem>>) attributes {dimension_semantics = [#tpu.dimension_semantics<parallel>], iteration_bounds = array<i64: 1>, scalar_prefetch = 0 : i64, scratch_operands = 0 : i64, tpu.core_type = #tpu.core_type<tc>, window_params = [{transform_indices = @transform_0, window_bounds = array<i64: 2, 4, 256>}, {pipeline_mode = #tpu.pipeline_mode<synchronous>, transform_indices = @transform_1, window_bounds = array<i64: 4, 128>}, {pipeline_mode = #tpu.pipeline_mode<synchronous>, transform_indices = @transform_2, window_bounds = array<i64: 1, 128>}, {transform_indices = @transform_3, window_bounds = array<i64: 2, 128>}]} {
    %c0 = arith.constant 0 : index
    %c0_0 = arith.constant 0 : index
    %c0_1 = arith.constant 0 : index
    %0 = vector.load %arg1[%c0, %c0_0, %c0_1] : memref<2x4x256xf32, #tpu.memory_space<vmem>>, vector<2x4x256xf32>
    %cst = arith.constant dense<0.000000e+00> : vector<2x4xf32>
    %1 = vector.multi_reduction <add>, %0, %cst [2] : vector<2x4x256xf32> to vector<2x4xf32>
    %c0_2 = arith.constant 0 : index
    %c0_3 = arith.constant 0 : index
    %2 = vector.load %arg2[%c0_2, %c0_3] : memref<4x128xf32, #tpu.memory_space<vmem>>, vector<4x128xf32>
    %cst_4 = arith.constant dense<0.000000e+00> : vector<2x128xf32>
    %3 = tpu.matmul %1, %2, %cst_4 {dimension_numbers = #tpu.dot_dimension_numbers<[1], [0], [0], [1], [0, 0, 1, 1], [], []>} : vector<2x4xf32>, vector<4x128xf32>, vector<2x128xf32> -> vector<2x128xf32>
    %c0_5 = arith.constant 0 : index
    %c0_6 = arith.constant 0 : index
    %4 = vector.load %arg3[%c0_5, %c0_6] : memref<1x128xf32, #tpu.memory_space<vmem>>, vector<1x128xf32>
    %5 = vector.broadcast %4 : vector<1x128xf32> to vector<2x128xf32>
    %6 = arith.addf %3, %5 : vector<2x128xf32>
    %c0_7 = arith.constant 0 : index
    %c0_8 = arith.constant 0 : index
    %7 = vector.load %arg4[%c0_7, %c0_8] : memref<2x128xf32, #tpu.memory_space<vmem>>, vector<2x128xf32>
    tpu.vector_store %arg4[%c0_7, %c0_8], %6 {strides = array<i32>} : memref<2x128xf32, #tpu.memory_space<vmem>>, vector<2x128xf32>,
    return
  }
  func.func @transform_0(%arg0: i32) -> (i32, i32, i32) {
    %c0_i32 = arith.constant 0 : i32
    %c0_i32_0 = arith.constant 0 : i32
    %c0_i32_1 = arith.constant 0 : i32
    return %arg0, %c0_i32, %c0_i32_0 : i32, i32, i32
  }
  func.func @transform_1(%arg0: i32) -> (i32, i32) {
    %c0_i32 = arith.constant 0 : i32
    %c0_i32_0 = arith.constant 0 : i32
    %c0_i32_1 = arith.constant 0 : i32
    return %c0_i32, %c0_i32_0 : i32, i32
  }
  func.func @transform_2(%arg0: i32) -> (i32, i32) {
    %c0_i32 = arith.constant 0 : i32
    %c0_i32_0 = arith.constant 0 : i32
    %c0_i32_1 = arith.constant 0 : i32
    return %c0_i32, %c0_i32_0 : i32, i32
  }
  func.func @transform_3(%arg0: i32) -> (i32, i32) {
    %c0_i32 = arith.constant 0 : i32
    %c0_i32_0 = arith.constant 0 : i32
    return %arg0, %c0_i32 : i32, i32
  }
}

</mosaic_0001>

<bundles_post_ra>
// kernel: tpu_custom_call.1
= control target key start
LH: loop header
LB: loop body
LE: loop exit
PB: predicated region body
PF: predicated region fallthrough
CT: control target
= control target key end

     0   :  { %8 = vsyncpa [#allocation3], 0  ;;  %s304_s0 = inlined_call_operand.hbm [shape: f32[2,4,256], index: 0, kind: input, shape index: {}]   ;;  %s305_s1 = inlined_call_operand.hbm [shape: f32[4,128], index: 1, kind: input, shape index: {}]   ;;  %s306_s2 = inlined_call_operand.vmem [shape: f32[1,128], index: 2, kind: input, shape index: {}]   ;;  %s307_s3 = inlined_call_operand.hbm [shape: f32[2,128], index: 3, kind: output, shape index: {}]  }
   0x1   :  { %9 = vsyncpa [#allocation6], 0 }
   0x2   :  { %10 = vsyncpa [#allocation4], 0  ;;  %s260_s12 = smov [#allocation2]  }
   0x3   :  { %s16_s13 = sshll.u32 %s260_s12, 4  ;;  %s17_s13 = int_to_ptr.vmem [resolvable:$true] %s16_s13 }
   0x4   :  { %s202_s14 = scalar_lea.vmem %s17_s13, 256  ;;  %p207_p1 = scmp.lt.s32.totalorder %s17_s13, %s17_s13 }
   0x5   :  { %p203_p0 = scmp.ne.s32.totalorder %s17_s13, %s202_s14  ;;  %p208_p2 = scmp.lt.s32.totalorder %s202_s14, %s202_s14 }
   0x7   :  { %p209_p3 = por %p208_p2, %p207_p1 }
   0x9   :  { %p210_p4 = pnand %p209_p3, %p203_p0 }
   0xb   :  { %213 = shalt.err (!%p210_p4)
}
   0xc   :  { %s261_s15 = smov 128   ;;  %s262_s16 = smov 8  }
   0xd   :  { %22 = dma.hbm_to_vmem [thread:$0]  %s304_s0, 256, %s17_s13, [#allocation3], %s261_s15, %s261_s15, %s262_s16  }
   0xe   :  { %s263_s19 = smov [#allocation5]  }
   0xf   :  { %s29_s20 = sshll.u32 %s263_s19, 4  ;;  %s30_s20 = int_to_ptr.vmem [resolvable:$true] %s29_s20 }
  0x10   :  { %s222_s21 = scalar_lea.vmem %s30_s20, 64  ;;  %p227_p6 = scmp.lt.s32.totalorder %s30_s20, %s30_s20 }
  0x11   :  { %p223_p5 = scmp.ne.s32.totalorder %s30_s20, %s222_s21  ;;  %p228_p7 = scmp.lt.s32.totalorder %s222_s21, %s222_s21 }
  0x13   :  { %p229_p8 = por %p228_p7, %p227_p6 }
  0x15   :  { %p230_p9 = pnand %p229_p8, %p223_p5 }
  0x17   :  { %233 = shalt.err (!%p230_p9)
}
  0x18   :  { %32 = dma.hbm_to_vmem [thread:$0]  %s305_s1, 64, %s30_s20, [#allocation6]  }
  0x19   :  { %254 = dma.done.wait [#allocation3], 256  }
  0x1a   :  { %255 = vsyncadd [#allocation3], 4294967040 }
  0x1b   :  { %256 = dma.done.wait [#allocation6], 64  }
  0x1c   :  { %257 = vsyncadd [#allocation6], 4294967232  ;;  %vm49_vm0 = vcmask 1043456   ;;  %v41_v0 = vld [vmem:[#allocation2] sm:$0xff]  ;;  %v42_v1 = vld [vmem:[#allocation2 + $0x8] sm:$0xff]  ;;  %v264_v11 = vmov 0.0   ;;  %v70_v12 = vlaneseq }
  0x1d   :  { %v45_v2 = vcombine.high %v41_v0, %v41_v0  ;;  %v50_v3 = vsel %vm49_vm0, %v41_v0, 0.0  ;;  %v46_v4 = vcombine.high %v42_v1, %v42_v1  ;;  %v55_v6 = vsel %vm49_vm0, %v42_v1, 0.0  ;;  %v60_v10 = vld [vmem:[#allocation5] sm:$0xf]  ;;  %180 = vmatprep.subr.mxu0 %v264_v11  ;;  %v175_v21 = vld [vmem:[%s306_s2] ss:$0 sm:$0xff] }
  0x1e   :  { %vm265_vm1 = vmmov 0   ;;  %181 = vmatpush3.msk.msra.mxu0 %vm49_vm0, %v60_v10  ;;  %v71_v13 = vand.u32 127, %v70_v12  ;;  %v73_v14 = vshrl.u32 %v70_v12, 7  ;;  %vm80_vm2 = vcmask 1041409   ;;  %s266_s24 = smov [#allocation7]  }
  0x1f   :  { %v51_v5 = vsel %vm49_vm0, %v45_v2, 0.0  ;;  %v56_v7 = vsel %vm49_vm0, %v46_v4, 0.0  ;;  %182 = vmatprep.mubr.msk.f32.mxu0 %vm265_vm1, %v264_v11  ;;  %vm82_vm3 = vcmask 31744   ;;  %s165_s25 = sshll.u32 %s266_s24, 4  ;;  %s166_s25 = int_to_ptr.vmem [resolvable:$true] %s165_s25 }
  0x20   :  { %v52_v8 = vadd.f32 %v51_v5, %v50_v3  ;;  %v57_v9 = vadd.f32 %v56_v7, %v55_v6  ;;  %v74_v16 = vsub.s32 %v71_v13, %v73_v14  ;;  %s234_s26 = scalar_lea.vmem %s166_s25, 32  ;;  %p239_p11 = scmp.lt.s32.totalorder %s166_s25, %s166_s25 }
  0x21   :  { %p235_p10 = scmp.ne.s32.totalorder %s166_s25, %s234_s26  ;;  %p240_p12 = scmp.lt.s32.totalorder %s234_s26, %s234_s26 }
  0x22   :  { %53 = vadd.xlane.f32.xlu0 %v52_v8 }
  0x23   :  { %p241_p13 = por %p240_p12, %p239_p11 }
  0x25   :  { %p242_p0 = pnand %p241_p13, %p235_p10 }
  0x26   :  { %58 = vadd.xlane.f32.xlu0 %v57_v9 }
  0xab   :  { %v54_v15 = vpop.xlane.xlu0 %53 }
  0xac   :  { %v75_v18 = vrot.slane %v54_v15, %v74_v16 }
  0xaf   :  { %v59_v17 = vpop.xlane.xlu0 %58 }
  0xb0   :  { %v79_v19 = vrot.slane %v59_v17, %v74_v16 }
  0xb2   :  { %v81_v20 = vsel %vm80_vm2, %v79_v19, %v75_v18 }
  0xb3   :  { %183 = vmatmul.mubr.msk.f32.vlgmr.msra.gmra.mxu0 %vm82_vm3, %v81_v20 }
 0x173   :  { %v154_v22 = vpop.f32.mrf.mxu0 }
 0x174   :  { %v155_v23 = vadd.f32 %v175_v21, %v154_v22 }
 0x175   :  { %v184_v24 = vpop.f32.mrf.mxu0 }
 0x176   :  { %158 = vst [vmem:[#allocation7] sm:$0x3] %v155_v23 }
 0x177   :  { %245 = shalt.err (!%p242_p0)
}
 0x178   :  { %168 = dma.vmem_to_hbm [thread:$0]  %s166_s25, 32, %s307_s3, [#allocation4]  }
 0x179   :  { %258 = dma.done.wait [#allocation4], 32  }
 0x17a   :  { %259 = vsyncadd [#allocation4], 4294967264 }
 0x17b   :  { %172 = vsyncpa [#allocation3], 1 }
 0x17c   :  { %173 = vsyncpa [#allocation6], 1 }
 0x17d   :  { %174 = vsyncpa [#allocation4], 1 }

</bundles_post_ra>
